<compile_context>
chip_gen: v6e
topology: v6e:2x2x1
jax: 0.10.0
libtpu: 0.0.40
codegen_flags: <defaults>
</compile_context>

<pallas_src>
import jax
import jax.numpy as jnp
from jax.experimental import pallas as pl
from jax.experimental.pallas import tpu as pltpu


def _round_up(v, m):
    return ((v + m - 1) // m) * m


# ---------------------------------------------------------------------------
# Kernel: one (tm, tn) output tile. The f32 output block is resident across the
# k grid axis (its BlockSpec ignores k), so it doubles as the accumulator.
# ---------------------------------------------------------------------------
def _linear_kernel(x_ref, w_ref, b_ref, o_ref):
    k = pl.program_id(2)

    @pl.when(k == 0)
    def _():
        # Initialize the resident output block with the broadcast bias:
        # removes the separate epilogue bias-add + accumulator copy.
        o_ref[...] = jnp.broadcast_to(b_ref[...], o_ref.shape).astype(o_ref.dtype)

    # Pure MXU accumulate: bf16 (tm, tk) @ bf16 (tk, tn) with f32 accumulation
    # directly into the f32 output block.
    o_ref[...] += jnp.dot(x_ref[...], w_ref[...],
                          preferred_element_type=jnp.float32)


# ---------------------------------------------------------------------------
# One-time parameter preparation (do this OUTSIDE the per-step path):
# transpose to (Cin, Cout), zero-pad to tile multiples, cast weight to bf16.
# ---------------------------------------------------------------------------
def prepare_classifier_params(weight, bias, *, batch_hint=16,
                              tm_max=256, tn_max=512, tk_max=1024):
    cout, cin = weight.shape

    tk = min(tk_max, _round_up(cin, 256))   # 256-aligned: v6e/v7x 2x256 MXU
    tn = min(tn_max, _round_up(cout, 256))

    # v7x has 2 TensorCores: if the batch ("parallel") axis collapses to a
    # single block, keep >= 2 blocks along Cout so the second core has work.
    single_batch_block = _round_up(batch_hint, 16) <= tm_max
    if single_batch_block and _round_up(cout, 256) >= 512:
        tn = min(tn, 256)

    kp = _round_up(cin, tk)
    np_ = _round_up(cout, tn)

    # Weight: (Cout, Cin) -> (Cin, Cout), zero-pad (padded Cin contributes 0),
    # cast to bf16 for the MXU / to halve the dominant HBM stream.
    w_prep = jnp.pad(weight.T.astype(jnp.float32),
                     ((0, kp - cin), (0, np_ - cout))).astype(jnp.bfloat16)
    # Bias stays f32: it seeds the f32 output/accumulator block.
    b_prep = jnp.pad(bias.astype(jnp.float32), (0, np_ - cout)).reshape(1, np_)

    return dict(w=w_prep, b=b_prep, cin=cin, cout=cout,
                kp=kp, np=np_, tk=tk, tn=tn, tm_max=tm_max)


# ---------------------------------------------------------------------------
# Forward pass with pre-prepared parameters.
# ---------------------------------------------------------------------------
def classifier_forward_prepared(x, params):
    batch, cin = x.shape
    assert cin == params["cin"], "x feature dim does not match prepared weight"
    cout = params["cout"]
    kp, np_, tk, tn = params["kp"], params["np"], params["tk"], params["tn"]

    tm = min(params["tm_max"], _round_up(batch, 16))   # 16 rows: bf16 sublanes
    bp = _round_up(batch, tm)

    # bf16 activations (accumulation stays f32 inside the kernel).
    xp = jnp.pad(x.astype(jnp.bfloat16), ((0, bp - batch), (0, kp - cin)))

    gi, gj, gk = bp // tm, np_ // tn, kp // tk
    grid = (gi, gj, gk)

    # Weight stream dominates DMA at small batch: triple-buffer it when the
    # pipeline actually has multiple steps to overlap.
    if gj * gk >= 3:
        w_spec = pl.BlockSpec((tk, tn), lambda i, j, k: (k, j),
                              pipeline_mode=pl.Buffered(3))
    else:
        w_spec = pl.BlockSpec((tk, tn), lambda i, j, k: (k, j))

    # Advisory cost estimate, including x / w re-reads across j / i blocks.
    cost = pl.CostEstimate(
        flops=2 * bp * kp * np_,
        transcendentals=0,
        bytes_accessed=int(xp.size * 2 * gj            # x re-read per j block
                           + params["w"].size * 2 * gi  # w re-read per i block
                           + params["b"].size * 4 * gi
                           + bp * np_ * 4),             # output written once
    )

    out_padded = pl.pallas_call(
        _linear_kernel,
        out_shape=jax.ShapeDtypeStruct((bp, np_), jnp.float32),
        grid_spec=pltpu.PrefetchScalarGridSpec(
            num_scalar_prefetch=0,
            grid=grid,
            in_specs=[
                pl.BlockSpec((tm, tk), lambda i, j, k: (i, k)),   # x tile
                w_spec,                                           # w tile
                pl.BlockSpec((1, tn), lambda i, j, k: (0, j)),    # bias tile
            ],
            out_specs=pl.BlockSpec((tm, tn), lambda i, j, k: (i, j)),
        ),
        compiler_params=pltpu.CompilerParams(
            dimension_semantics=("parallel", "parallel", "arbitrary"),
            # Max footprint at default tiles is ~5 MiB (double/triple-buffered
            # bf16 tiles + f32 out); 32 MiB fits all parts (v7x scoped = 32 MiB)
            # and lifts v5e's 16 MiB default for larger tile sweeps.
            vmem_limit_bytes=32 * 1024 * 1024,
        ),
        cost_estimate=cost,
    )(xp, params["w"], params["b"])

    return out_padded[:batch, :cout].astype(x.dtype)


# ---------------------------------------------------------------------------
# Convenience wrapper matching nn.Linear semantics, with a tiny-layer bypass.
# ---------------------------------------------------------------------------
def classifier_forward(x, weight, bias, *, force_pallas=False):
    batch, cin = x.shape
    cout = weight.shape[0]
    tiny = batch <= 16 and cin <= 128 and cout <= 128
    if tiny and not force_pallas:
        # Padding to MXU tiles would inflate FLOPs >30x; XLA's fused matmul
        # wins at these shapes.
        return x @ weight.T + bias
    params = prepare_classifier_params(weight, bias, batch_hint=batch)
    return classifier_forward_prepared(x, params)


if __name__ == "__main__":
    # Small shapes consistent with Classifier(in_channels=32, out_channels=16).
    batch = 8
    in_channels = 32
    out_channels = 16

    key = jax.random.PRNGKey(0)
    kx, kw, kb = jax.random.split(key, 3)

    # Deterministic init mimicking nn.Linear default (uniform +/- 1/sqrt(fan_in)).
    bound = 1.0 / (in_channels ** 0.5)
    x = jax.random.normal(kx, (batch, in_channels), dtype=jnp.float32)
    weight = jax.random.uniform(kw, (out_channels, in_channels),
                                minval=-bound, maxval=bound, dtype=jnp.float32)
    bias = jax.random.uniform(kb, (out_channels,),
                              minval=-bound, maxval=bound, dtype=jnp.float32)

    # Prepare the weight/bias once (transpose + pad + bf16 cast), then run the
    # Pallas kernel path explicitly so it is exercised at this tiny size.
    params = prepare_classifier_params(weight, bias, batch_hint=batch)
    logits = classifier_forward_prepared(x, params)
    jax.block_until_ready(logits)

    # References.
    ref_f32 = x @ weight.T + bias
    x_bf = x.astype(jnp.bfloat16).astype(jnp.float32)
    w_bf = weight.astype(jnp.bfloat16).astype(jnp.float32)
    ref_bf16 = x_bf @ w_bf.T + bias

    assert logits.shape == (batch, out_channels)
    # Loose check vs the f32 nn.Linear reference (bf16 input rounding).
    assert jnp.allclose(logits, ref_f32, atol=5e-2, rtol=5e-2), \
        float(jnp.max(jnp.abs(logits - ref_f32)))
    # Tight check vs the bf16-rounded-input reference.
    assert jnp.allclose(logits, ref_bf16, atol=1e-3, rtol=1e-3), \
        float(jnp.max(jnp.abs(logits - ref_bf16)))

    # Auto wrapper: tiny layers fall back to the fused XLA matmul path.
    auto = classifier_forward(x, weight, bias)
    assert jnp.allclose(auto, ref_f32, atol=1e-5, rtol=1e-5)

    print("KERNEL_OK")
</pallas_src>

<mosaic_0001>
module attributes {stable_mosaic.version = 11 : i64} {
  func.func @_linear_kernel(%arg0: i32, %arg1: i32, %arg2: i32, %arg3: memref<16x256xbf16, #tpu.memory_space<vmem>>, %arg4: memref<256x256xbf16, #tpu.memory_space<vmem>>, %arg5: memref<1x256xf32, #tpu.memory_space<vmem>>, %arg6: memref<16x256xf32, #tpu.memory_space<vmem>>) attributes {dimension_semantics = [#tpu.dimension_semantics<parallel>, #tpu.dimension_semantics<parallel>, #tpu.dimension_semantics<arbitrary>], iteration_bounds = array<i64: 1, 1, 1>, scalar_prefetch = 0 : i64, scratch_operands = 0 : i64, tpu.core_type = #tpu.core_type<tc>, window_params = [{transform_indices = @transform_0, window_bounds = array<i64: 16, 256>}, {transform_indices = @transform_1, window_bounds = array<i64: 256, 256>}, {transform_indices = @transform_2, window_bounds = array<i64: 1, 256>}, {transform_indices = @transform_3, window_bounds = array<i64: 16, 256>}]} {
    %c0_i32 = arith.constant 0 : i32
    %0 = arith.cmpi eq, %arg2, %c0_i32 : i32
    %1 = arith.extui %0 : i1 to i32
    %c0_i32_0 = arith.constant 0 : i32
    %2 = arith.cmpi ne, %1, %c0_i32_0 : i32
    scf.if %2 {
      %c0_8 = arith.constant 0 : index
      %c0_9 = arith.constant 0 : index
      %9 = vector.load %arg5[%c0_8, %c0_9] : memref<1x256xf32, #tpu.memory_space<vmem>>, vector<1x256xf32>
      %10 = vector.shape_cast %9 : vector<1x256xf32> to vector<1x256xf32>
      %11 = vector.broadcast %10 : vector<1x256xf32> to vector<16x256xf32>
      %c0_10 = arith.constant 0 : index
      %c0_11 = arith.constant 0 : index
      %12 = vector.load %arg6[%c0_10, %c0_11] : memref<16x256xf32, #tpu.memory_space<vmem>>, vector<16x256xf32>
      tpu.vector_store %arg6[%c0_10, %c0_11], %11 {strides = array<i32>} : memref<16x256xf32, #tpu.memory_space<vmem>>, vector<16x256xf32>,
    } else {
    }
    %c0 = arith.constant 0 : index
    %c0_1 = arith.constant 0 : index
    %3 = vector.load %arg6[%c0, %c0_1] : memref<16x256xf32, #tpu.memory_space<vmem>>, vector<16x256xf32>
    %c0_2 = arith.constant 0 : index
    %c0_3 = arith.constant 0 : index
    %4 = vector.load %arg3[%c0_2, %c0_3] : memref<16x256xbf16, #tpu.memory_space<vmem>>, vector<16x256xbf16>
    %c0_4 = arith.constant 0 : index
    %c0_5 = arith.constant 0 : index
    %5 = vector.load %arg4[%c0_4, %c0_5] : memref<256x256xbf16, #tpu.memory_space<vmem>>, vector<256x256xbf16>
    %cst = arith.constant dense<0.000000e+00> : vector<16x256xf32>
    %6 = tpu.matmul %4, %5, %cst {dimension_numbers = #tpu.dot_dimension_numbers<[1], [0], [0], [1], [0, 0, 1, 1], [], []>} : vector<16x256xbf16>, vector<256x256xbf16>, vector<16x256xf32> -> vector<16x256xf32>
    %7 = arith.addf %3, %6 : vector<16x256xf32>
    %c0_6 = arith.constant 0 : index
    %c0_7 = arith.constant 0 : index
    %8 = vector.load %arg6[%c0_6, %c0_7] : memref<16x256xf32, #tpu.memory_space<vmem>>, vector<16x256xf32>
    tpu.vector_store %arg6[%c0_6, %c0_7], %7 {strides = array<i32>} : memref<16x256xf32, #tpu.memory_space<vmem>>, vector<16x256xf32>,
    return
  }
  func.func @transform_0(%arg0: i32, %arg1: i32, %arg2: i32) -> (i32, i32) {
    %c0_i32 = arith.constant 0 : i32
    return %arg0, %arg2 : i32, i32
  }
  func.func @transform_1(%arg0: i32, %arg1: i32, %arg2: i32) -> (i32, i32) {
    %c0_i32 = arith.constant 0 : i32
    return %arg2, %arg1 : i32, i32
  }
  func.func @transform_2(%arg0: i32, %arg1: i32, %arg2: i32) -> (i32, i32) {
    %c0_i32 = arith.constant 0 : i32
    %c0_i32_0 = arith.constant 0 : i32
    return %c0_i32, %arg1 : i32, i32
  }
  func.func @transform_3(%arg0: i32, %arg1: i32, %arg2: i32) -> (i32, i32) {
    %c0_i32 = arith.constant 0 : i32
    return %arg0, %arg1 : i32, i32
  }
}

</mosaic_0001>

<bundles_post_ra>
// kernel: tpu_custom_call.1
= control target key start
LH: loop header
LB: loop body
LE: loop exit
PB: predicated region body
PF: predicated region fallthrough
CT: control target
= control target key end

     0   :  { %8 = vsyncpa [#allocation3], 0  ;;  %s537_s0 = inlined_call_operand.hbm [shape: bf16[16,256], index: 0, kind: input, shape index: {}]   ;;  %s538_s1 = inlined_call_operand.hbm [shape: bf16[256,256], index: 1, kind: input, shape index: {}]   ;;  %s539_s2 = inlined_call_operand.vmem [shape: f32[1,256], index: 2, kind: input, shape index: {}]   ;;  %s540_s3 = inlined_call_operand.hbm [shape: f32[16,256], index: 3, kind: output, shape index: {}]  }
   0x1   :  { %9 = vsyncpa [#allocation6], 0 }
   0x2   :  { %10 = vsyncpa [#allocation4], 0  ;;  %s498_s12 = smov [#allocation2]  }
   0x3   :  { %s16_s13 = sshll.u32 %s498_s12, 4  ;;  %s17_s13 = int_to_ptr.vmem [resolvable:$true] %s16_s13 }
   0x4   :  { %s440_s14 = scalar_lea.vmem %s17_s13, 256  ;;  %p445_p1 = scmp.lt.s32.totalorder %s17_s13, %s17_s13 }
   0x5   :  { %p441_p0 = scmp.ne.s32.totalorder %s17_s13, %s440_s14  ;;  %p446_p2 = scmp.lt.s32.totalorder %s440_s14, %s440_s14 }
   0x7   :  { %p447_p3 = por %p446_p2, %p445_p1 }
   0x9   :  { %p448_p4 = pnand %p447_p3, %p441_p0 }
   0xb   :  { %451 = shalt.err (!%p448_p4)
}
   0xc   :  { %s499_s15 = smov 128   ;;  %s500_s16 = smov 8  }
   0xd   :  { %22 = dma.hbm_to_vmem [thread:$0]  %s537_s0, 256, %s17_s13, [#allocation3], %s499_s15, %s499_s15, %s500_s16  }
   0xe   :  { %s501_s19 = smov [#allocation5]  }
   0xf   :  { %s28_s20 = sshll.u32 %s501_s19, 4  ;;  %s29_s20 = int_to_ptr.vmem [resolvable:$true] %s28_s20 }
  0x10   :  { %s460_s21 = scalar_lea.vmem %s29_s20, 4096  ;;  %p465_p6 = scmp.lt.s32.totalorder %s29_s20, %s29_s20 }
  0x11   :  { %p461_p5 = scmp.ne.s32.totalorder %s29_s20, %s460_s21  ;;  %p466_p7 = scmp.lt.s32.totalorder %s460_s21, %s460_s21 }
  0x13   :  { %p467_p8 = por %p466_p7, %p465_p6 }
  0x15   :  { %p468_p9 = pnand %p467_p8, %p461_p5 }
  0x17   :  { %471 = shalt.err (!%p468_p9)
}
  0x18   :  { %34 = dma.hbm_to_vmem [thread:$0]  %s538_s1, 4096, %s29_s20, [#allocation6], %s499_s15, %s499_s15, %s500_s16  }
  0x19   :  { %492 = dma.done.wait [#allocation3], 256  }
  0x1a   :  { %493 = vsyncadd [#allocation3], 4294967040 }
  0x1b   :  { %494 = dma.done.wait [#allocation6], 4096  }
  0x1c   :  { %495 = vsyncadd [#allocation6], 4294963200  ;;  %v381_v0 = vld [vmem:[#allocation5 + $0x74] ss:$8 sps:$4 sm:$0xff]   ;;  %v383_v1 = vld [vmem:[#allocation5 + $0x70] ss:$8 sps:$4 sm:$0xff]   ;;  %v49_v34 = vlaneseq }
  0x1d   :  { %271 = vmatprep.subr.bf16.mxu0 %v381_v0  ;;  %v384_v2 = vld [vmem:[#allocation5 + $0x64] ss:$8 sps:$4 sm:$0xff]   ;;  %v386_v3 = vld [vmem:[#allocation5 + $0x60] ss:$8 sps:$4 sm:$0xff]   ;;  %v387_v4 = vld [vmem:[#allocation5 + $0x54] ss:$8 sps:$4 sm:$0xff]  }
  0x1e   :  { %272 = vmatpush1.bf16.msra.mxu0 %v383_v1  ;;  %v389_v5 = vld [vmem:[#allocation5 + $0x50] ss:$8 sps:$4 sm:$0xff]   ;;  %v390_v6 = vld [vmem:[#allocation5 + $0x44] ss:$8 sps:$4 sm:$0xff]   ;;  %v392_v7 = vld [vmem:[#allocation5 + $0x40] ss:$8 sps:$4 sm:$0xff]  }
  0x1f   :  { %273 = vmatprep.subr.bf16.mxu0 %v384_v2  ;;  %v393_v8 = vld [vmem:[#allocation5 + $0x34] ss:$8 sps:$4 sm:$0xff]   ;;  %v395_v9 = vld [vmem:[#allocation5 + $0x30] ss:$8 sps:$4 sm:$0xff]   ;;  %v396_v10 = vld [vmem:[#allocation5 + $0x24] ss:$8 sps:$4 sm:$0xff]  }
  0x20   :  { %v398_v11 = vld [vmem:[#allocation5 + $0x20] ss:$8 sps:$4 sm:$0xff]   ;;  %v399_v12 = vld [vmem:[#allocation5 + $0x14] ss:$8 sps:$4 sm:$0xff]   ;;  %v401_v14 = vld [vmem:[#allocation5 + $0x10] ss:$8 sps:$4 sm:$0xff]  }
  0x21   :  { %v431_v13 = vld [vmem:[#allocation2 + $0x4] ss:$8 sps:$4 sm:$0xff]   ;;  %v402_v15 = vld [vmem:[#allocation5 + $0x4] ss:$8 sps:$4 sm:$0xff]   ;;  %v404_v16 = vld [vmem:[#allocation5] ss:$8 sps:$4 sm:$0xff]  }
  0x22   :  { %274 = vmatpush1.bf16.msra.mxu0 %v386_v3  ;;  %303 = vmatprep.mubr.bf16.mxu0 %v431_v13  ;;  %v405_v17 = vld [vmem:[#allocation5 + $0xf4] ss:$8 sps:$4 sm:$0xff]   ;;  %v407_v18 = vld [vmem:[#allocation5 + $0xf0] ss:$8 sps:$4 sm:$0xff]   ;;  %v408_v19 = vld [vmem:[#allocation5 + $0xe4] ss:$8 sps:$4 sm:$0xff]  }
  0x23   :  { %275 = vmatprep.subr.bf16.mxu0 %v387_v4  ;;  %v410_v20 = vld [vmem:[#allocation5 + $0xe0] ss:$8 sps:$4 sm:$0xff]   ;;  %v411_v21 = vld [vmem:[#allocation5 + $0xd4] ss:$8 sps:$4 sm:$0xff]   ;;  %v413_v22 = vld [vmem:[#allocation5 + $0xd0] ss:$8 sps:$4 sm:$0xff]  }
  0x24   :  { %v414_v23 = vld [vmem:[#allocation5 + $0xc4] ss:$8 sps:$4 sm:$0xff]   ;;  %v416_v24 = vld [vmem:[#allocation5 + $0xc0] ss:$8 sps:$4 sm:$0xff]   ;;  %v417_v25 = vld [vmem:[#allocation5 + $0xb4] ss:$8 sps:$4 sm:$0xff]  }
  0x25   :  { %v419_v26 = vld [vmem:[#allocation5 + $0xb0] ss:$8 sps:$4 sm:$0xff]   ;;  %v420_v27 = vld [vmem:[#allocation5 + $0xa4] ss:$8 sps:$4 sm:$0xff]   ;;  %v422_v28 = vld [vmem:[#allocation5 + $0xa0] ss:$8 sps:$4 sm:$0xff]  }
  0x26   :  { %276 = vmatpush1.bf16.msra.mxu0 %v389_v5  ;;  %v423_v29 = vld [vmem:[#allocation5 + $0x94] ss:$8 sps:$4 sm:$0xff]   ;;  %v425_v30 = vld [vmem:[#allocation5 + $0x90] ss:$8 sps:$4 sm:$0xff]   ;;  %v426_v31 = vld [vmem:[#allocation5 + $0x84] ss:$8 sps:$4 sm:$0xff]  }
  0x27   :  { %277 = vmatprep.subr.bf16.mxu0 %v390_v6  ;;  %v428_v32 = vld [vmem:[#allocation5 + $0x80] ss:$8 sps:$4 sm:$0xff]   ;;  %v429_v33 = vld [vmem:[#allocation2] ss:$8 sps:$4 sm:$0xff]   ;;  %v50_v35 = vshrl.u32 %v49_v34, 7  ;;  %s502_s24 = smov [#allocation7]  }
  0x28   :  { %v47_v37 = vld [vmem:[%s539_s2] sm:$0x3]  ;;  %s327_s25 = sshll.u32 %s502_s24, 4  ;;  %s328_s25 = int_to_ptr.vmem [resolvable:$true] %s327_s25 }
  0x29   :  { %v51_v36 = vsub.s32 0, %v50_v35  ;;  %v55_v38 = vsub.s32 1, %v50_v35  ;;  %s472_s26 = scalar_lea.vmem %s328_s25, 512  ;;  %p477_p11 = scmp.lt.s32.totalorder %s328_s25, %s328_s25 }
  0x2a   :  { %278 = vmatpush1.bf16.msra.mxu0 %v392_v7  ;;  %p473_p10 = scmp.ne.s32.totalorder %s328_s25, %s472_s26  ;;  %p478_p12 = scmp.lt.s32.totalorder %s472_s26, %s472_s26 }
  0x2b   :  { %279 = vmatprep.subr.bf16.mxu0 %v393_v8  ;;  %v52_v39 = vrot.slane %v47_v37, %v51_v36  ;;  %v56_v40 = vrot.slane %v47_v37, %v55_v38 }
  0x2c   :  { %p479_p13 = por %p478_p12, %p477_p11 }
  0x2e   :  { %280 = vmatpush1.bf16.msra.mxu0 %v395_v9  ;;  %p480_p0 = pnand %p479_p13, %p473_p10 }
  0x2f   :  { %281 = vmatprep.subr.bf16.mxu0 %v396_v10 }
  0x32   :  { %282 = vmatpush1.bf16.msra.mxu0 %v398_v11 }
  0x33   :  { %283 = vmatprep.subr.bf16.mxu0 %v399_v12 }
  0x36   :  { %284 = vmatpush1.bf16.msra.mxu0 %v401_v14 }
  0x37   :  { %285 = vmatprep.subr.bf16.mxu0 %v402_v15 }
  0x3a   :  { %286 = vmatpush1.bf16.msra.mxu0 %v404_v16 }
  0x3b   :  { %287 = vmatprep.subr.bf16.mxu0 %v405_v17 }
  0x3e   :  { %288 = vmatpush2.bf16.msra.mxu0 %v407_v18 }
  0x3f   :  { %289 = vmatprep.subr.bf16.mxu0 %v408_v19 }
  0x42   :  { %290 = vmatpush2.bf16.msra.mxu0 %v410_v20 }
  0x43   :  { %291 = vmatprep.subr.bf16.mxu0 %v411_v21 }
  0x46   :  { %292 = vmatpush2.bf16.msra.mxu0 %v413_v22 }
  0x47   :  { %293 = vmatprep.subr.bf16.mxu0 %v414_v23 }
  0x4a   :  { %294 = vmatpush2.bf16.msra.mxu0 %v416_v24 }
  0x4b   :  { %295 = vmatprep.subr.bf16.mxu0 %v417_v25 }
  0x4e   :  { %296 = vmatpush2.bf16.msra.mxu0 %v419_v26 }
  0x4f   :  { %297 = vmatprep.subr.bf16.mxu0 %v420_v27 }
  0x52   :  { %298 = vmatpush2.bf16.msra.mxu0 %v422_v28 }
  0x53   :  { %299 = vmatprep.subr.bf16.mxu0 %v423_v29 }
  0x56   :  { %300 = vmatpush2.bf16.msra.mxu0 %v425_v30 }
  0x57   :  { %301 = vmatprep.subr.bf16.mxu0 %v426_v31 }
  0x5a   :  { %302 = vmatpush2.bf16.msra.mxu0 %v428_v32 }
  0x5d   :  { %304 = vmatmul.mubr.bf16.vlgmr.msra.gmra.mxu0 %v429_v33 }
 0x11d   :  { %v305_v41 = vpop.f32.mrf.mxu0 }
 0x11e   :  { %v314_v42 = vadd.f32 %v305_v41, %v52_v39 }
 0x11f   :  { %v307_v43 = vpop.f32.mrf.mxu0 }
 0x120   :  { %318 = vst [vmem:[#allocation7] sm:$0xff] %v314_v42  ;;  %v315_v44 = vadd.f32 %v307_v43, %v56_v40 }
 0x121   :  { %v309_v45 = vpop.f32.mrf.mxu0 }
 0x122   :  { %319 = vst [vmem:[#allocation7 + $0x8] sm:$0xff] %v315_v44  ;;  %v316_v46 = vadd.f32 %v309_v45, %v52_v39 }
 0x123   :  { %v311_v47 = vpop.f32.mrf.mxu0 }
 0x124   :  { %320 = vst [vmem:[#allocation7 + $0x10] sm:$0xff] %v316_v46  ;;  %v317_v48 = vadd.f32 %v311_v47, %v56_v40 }
 0x126   :  { %321 = vst [vmem:[#allocation7 + $0x18] sm:$0xff] %v317_v48 }
 0x127   :  { %483 = shalt.err (!%p480_p0)
}
 0x128   :  { %s503_s2 = smov 256   ;;  %s504_s27 = smov 16  }
 0x129   :  { %333 = dma.vmem_to_hbm [thread:$0]  %s328_s25, 512, %s540_s3, [#allocation4], %s503_s2, %s503_s2, %s504_s27  }
 0x12a   :  { %496 = dma.done.wait [#allocation4], 512  }
 0x12b   :  { %497 = vsyncadd [#allocation4], 4294966784 }
 0x12c   :  { %337 = vsyncpa [#allocation3], 1 }
 0x12d   :  { %338 = vsyncpa [#allocation6], 1 }
 0x12e   :  { %339 = vsyncpa [#allocation4], 1 }

</bundles_post_ra>
